<compile_context>
chip_gen: v6e
topology: v6e:2x2x1
jax: 0.10.0
libtpu: 0.0.40
codegen_flags: <defaults>
</compile_context>

<pallas_src>
import functools

import numpy as np
import jax
import jax.numpy as jnp
from jax.experimental import pallas as pl
from jax.experimental.pallas import tpu as pltpu


# -----------------------------------------------------------------------------
# Fused Pallas kernel
# -----------------------------------------------------------------------------
def _basic_block_kernel(x_ref, w1_ref, b1_ref, w2_ref, b2_ref, out_ref,
                        xpad_ref, hpad_ref, *, N, H, W, Cin, Cout, K, PAD):
    """Whole BasicBlock in one invocation.

    Layouts (all lane-dense, W and C folded onto the lane axis):
      x_ref    : (N*H,  W*Cin)          f32   natural flattening of NHWC
      w1_ref   : (K, Wp*Cin, W*2*Cout)  bf16  banded conv1 weights; shortcut
                                              fused into the last W*Cout cols
      b1_ref   : (1, W*2*Cout)          f32
      w2_ref   : (K, Wp*Cout, W*Cout)   bf16  banded conv2 weights
      b2_ref   : (1, W*Cout)            f32
      out_ref  : (H, N*W*Cout)          f32   one unmasked (8,128) store
      xpad_ref : (N*Hp, Wp*Cin)         f32   scratch: zero-padded input
      hpad_ref : (N*Hp, Wp*Cout)        f32   scratch: zero-padded conv1 out
    """
    Hp = H + 2 * PAD
    CO = W * Cout                       # per-batch lane width of a conv result

    # The dense padded scratch is tiny (a few vregs); zero it once, then only
    # the halo stays zero after the interior writes below.
    xpad_ref[...] = jnp.zeros_like(xpad_ref)
    hpad_ref[...] = jnp.zeros_like(hpad_ref)

    wdt = w1_ref.dtype                  # bf16 MXU inputs, f32 accumulation
    outs = []
    for n in range(N):                  # static unroll (N is small)
        r0 = n * Hp + PAD

        # ---- place this batch element inside the padded buffer -------------
        xpad_ref[r0:r0 + H, PAD * Cin:PAD * Cin + W * Cin] = \
            x_ref[n * H:(n + 1) * H, :]

        # ---- conv1 (+BN1) and the 1x1 shortcut (+BN) as ONE banded dot -----
        acc1 = jnp.zeros((H, 2 * CO), jnp.float32)
        for kh in range(K):
            lhs = xpad_ref[n * Hp + kh:n * Hp + kh + H, :]      # (H, Wp*Cin)
            acc1 += jnp.dot(lhs.astype(wdt), w1_ref[kh],
                            preferred_element_type=jnp.float32)
        acc1 += b1_ref[...]
        h = jnp.maximum(acc1[:, :CO], 0.0)                      # conv1 + ReLU
        sc = acc1[:, CO:]                                       # shortcut

        # ---- conv2 (+BN2) ---------------------------------------------------
        hpad_ref[r0:r0 + H, PAD * Cout:PAD * Cout + CO] = h
        acc2 = jnp.zeros((H, CO), jnp.float32)
        for kh in range(K):
            lhs = hpad_ref[n * Hp + kh:n * Hp + kh + H, :]      # (H, Wp*Cout)
            acc2 += jnp.dot(lhs.astype(wdt), w2_ref[kh],
                            preferred_element_type=jnp.float32)

        outs.append(jnp.maximum(acc2 + b2_ref[...] + sc, 0.0))  # (H, CO)

    # Lane-dense output: one full-width unmasked store.
    out_ref[...] = jnp.concatenate(outs, axis=1).astype(out_ref.dtype)


# -----------------------------------------------------------------------------
# Parameter preparation (done once, outside the per-forward path)
# -----------------------------------------------------------------------------
def prepare_block_params(params, *, width, padding, eps=1e-5,
                         weight_dtype=jnp.bfloat16):
    """Fold conv bias + eval-mode BatchNorm into the conv weights, fuse the
    shortcut projection (or identity) into conv1's weight, and repack every
    conv as K 'banded' (Wp*Ci, W*Co) matrices so the in-kernel convolution is
    a plain MXU dot over lane-dense (row, W*C) slabs."""
    def fold(w_hwio, conv_bias, gamma, beta, mean, var):
        s = np.asarray(gamma, np.float32) / np.sqrt(np.asarray(var, np.float32) + eps)
        w = np.asarray(w_hwio, np.float32) * s                  # scale out-chan
        b = ((np.asarray(conv_bias, np.float32) - np.asarray(mean, np.float32)) * s
             + np.asarray(beta, np.float32))
        return w, b.astype(np.float32)

    K, _, Cin, Cout = params["w1"].shape
    assert 2 * padding == K - 1, "BasicBlock residual add needs 2*padding == K-1"
    W = width
    Wp = W + 2 * padding
    has_proj = Cin != Cout

    w1, b1 = fold(params["w1"], params["b1"], params["g1"], params["beta1"],
                  params["m1"], params["v1"])
    w2, b2 = fold(params["w2"], params["b2"], params["g2"], params["beta2"],
                  params["m2"], params["v2"])
    if has_proj:
        ws, bs = fold(params["ws"], np.zeros((Cout,), np.float32), params["gs"],
                      params["betas"], params["ms"], params["vs"])
        ws = ws.reshape(Cin, Cout)
    else:                                   # identity shortcut == eye 1x1 conv
        ws = np.eye(Cout, dtype=np.float32)
        bs = np.zeros((Cout,), np.float32)

    # conv1 + fused shortcut: (K, Wp*Cin, 2*W*Cout)
    w1b = np.zeros((K, Wp * Cin, 2 * W * Cout), np.float32)
    for kh in range(K):
        for w in range(W):
            for kw in range(K):
                w1b[kh, (w + kw) * Cin:(w + kw + 1) * Cin,
                    w * Cout:(w + 1) * Cout] = w1[kh, kw]
            if kh == padding:               # 1x1 shortcut = centre tap only
                w1b[kh, (w + padding) * Cin:(w + padding + 1) * Cin,
                    W * Cout + w * Cout:W * Cout + (w + 1) * Cout] = ws

    # conv2: (K, Wp*Cout, W*Cout)
    w2b = np.zeros((K, Wp * Cout, W * Cout), np.float32)
    for kh in range(K):
        for w in range(W):
            for kw in range(K):
                w2b[kh, (w + kw) * Cout:(w + kw + 1) * Cout,
                    w * Cout:(w + 1) * Cout] = w2[kh, kw]

    b1ext = np.concatenate([np.tile(b1, W), np.tile(bs, W)]).reshape(1, -1)
    b2row = np.tile(b2, W).reshape(1, -1)

    return {
        "K": int(K), "PAD": int(padding), "Cin": int(Cin), "Cout": int(Cout),
        "W": int(W),
        "w1": jnp.asarray(w1b, weight_dtype),
        "b1": jnp.asarray(b1ext, jnp.float32),
        "w2": jnp.asarray(w2b, weight_dtype),
        "b2": jnp.asarray(b2row, jnp.float32),
    }


# -----------------------------------------------------------------------------
# Forward wrapper (single pallas_call)
# -----------------------------------------------------------------------------
def basic_block_forward(x_nhwc, packed):
    N, H, W, Cin = x_nhwc.shape
    assert W == packed["W"] and Cin == packed["Cin"]
    K, PAD, Cout = packed["K"], packed["PAD"], packed["Cout"]
    Hp, Wp = H + 2 * PAD, W + 2 * PAD

    # Lane-dense input: fold W and C onto the lane axis (free reshape of NHWC).
    x2d = x_nhwc.reshape(N * H, W * Cin).astype(jnp.float32)

    kern = functools.partial(_basic_block_kernel, N=N, H=H, W=W, Cin=Cin,
                             Cout=Cout, K=K, PAD=PAD)
    vmem = pl.BlockSpec(memory_space=pltpu.MemorySpace.VMEM)
    out2d = pl.pallas_call(
        kern,
        out_shape=jax.ShapeDtypeStruct((H, N * W * Cout), jnp.float32),
        in_specs=[vmem] * 5,
        out_specs=vmem,
        scratch_shapes=[
            pltpu.VMEM((N * Hp, Wp * Cin), jnp.float32),    # padded input
            pltpu.VMEM((N * Hp, Wp * Cout), jnp.float32),   # padded conv1 out
        ],
    )(x2d, packed["w1"], packed["b1"], packed["w2"], packed["b2"])

    # Un-flatten (H, [n, w, c]) -> NHWC.  Pure wrapper-side layout plumbing.
    return out2d.reshape(H, N, W, Cout).transpose(1, 0, 2, 3)


# -----------------------------------------------------------------------------
# Pure-JAX reference (for correctness check)
# -----------------------------------------------------------------------------
def _fold_bn(conv_bias, gamma, beta, mean, var, eps=1e-5):
    scale = gamma / jnp.sqrt(var + eps)
    bias = (conv_bias - mean) * scale + beta
    return scale, bias


def _ref_conv(x, w, pad):
    return jax.lax.conv_general_dilated(
        x, w, window_strides=(1, 1), padding=[(pad, pad), (pad, pad)],
        dimension_numbers=("NHWC", "HWIO", "NHWC"))


def ref_forward(x_nhwc, params, *, padding):
    s1, b1 = _fold_bn(params["b1"], params["g1"], params["beta1"],
                      params["m1"], params["v1"])
    h = jnp.maximum(_ref_conv(x_nhwc, params["w1"], padding) * s1 + b1, 0.0)
    s2, b2 = _fold_bn(params["b2"], params["g2"], params["beta2"],
                      params["m2"], params["v2"])
    r = _ref_conv(h, params["w2"], padding) * s2 + b2
    Cin, Cout = x_nhwc.shape[-1], params["w1"].shape[-1]
    if Cin == Cout:
        sc = x_nhwc
    else:
        ss, bs = _fold_bn(jnp.zeros((Cout,), jnp.float32), params["gs"],
                          params["betas"], params["ms"], params["vs"])
        sc = _ref_conv(x_nhwc, params["ws"], 0) * ss + bs
    return jnp.maximum(r + sc, 0.0)


# -----------------------------------------------------------------------------
def _make_params(ks, K, Cin, Cout, with_proj):
    p = {
        "w1": 0.1 * jax.random.normal(ks[0], (K, K, Cin, Cout), jnp.float32),
        "b1": 0.1 * jax.random.normal(ks[1], (Cout,), jnp.float32),
        "g1": 1.0 + 0.1 * jax.random.normal(ks[2], (Cout,), jnp.float32),
        "beta1": 0.1 * jax.random.normal(ks[3], (Cout,), jnp.float32),
        "m1": 0.1 * jax.random.normal(ks[4], (Cout,), jnp.float32),
        "v1": 0.5 + jax.random.uniform(ks[5], (Cout,), jnp.float32),
        "w2": 0.1 * jax.random.normal(ks[6], (K, K, Cout, Cout), jnp.float32),
        "b2": 0.1 * jax.random.normal(ks[7], (Cout,), jnp.float32),
        "g2": 1.0 + 0.1 * jax.random.normal(ks[8], (Cout,), jnp.float32),
        "beta2": 0.1 * jax.random.normal(ks[9], (Cout,), jnp.float32),
        "m2": 0.1 * jax.random.normal(ks[10], (Cout,), jnp.float32),
        "v2": 0.5 + jax.random.uniform(ks[11], (Cout,), jnp.float32),
    }
    if with_proj:
        p.update({
            "ws": 0.1 * jax.random.normal(ks[12], (1, 1, Cin, Cout), jnp.float32),
            "gs": 1.0 + 0.1 * jax.random.normal(ks[13], (Cout,), jnp.float32),
            "betas": 0.1 * jax.random.normal(ks[14], (Cout,), jnp.float32),
            "ms": jnp.zeros((Cout,), jnp.float32),
            "vs": jnp.ones((Cout,), jnp.float32),
        })
    return p


if __name__ == "__main__":
    # Small shapes consistent with the module (Othello boards are 8x8).
    N, Cin, Cout, H, W = 2, 4, 8, 8, 8
    K, PAD = 3, 1

    key = jax.random.PRNGKey(0)
    ks = jax.random.split(key, 32)

    # --- case 1: channel-changing block (1x1 projection shortcut) -----------
    x_nchw = jax.random.normal(ks[0], (N, Cin, H, W), jnp.float32)
    x_nhwc = jnp.transpose(x_nchw, (0, 2, 3, 1))
    params = _make_params(ks[1:16], K, Cin, Cout, with_proj=True)

    packed = prepare_block_params(params, width=W, padding=PAD)
    out = jax.block_until_ready(basic_block_forward(x_nhwc, packed))
    ref = ref_forward(x_nhwc, params, padding=PAD)
    assert out.shape == (N, H, W, Cout)
    # bf16 MXU inputs (f32 accumulation) vs full-f32 reference -> loose tol.
    assert jnp.allclose(out, ref, rtol=5e-2, atol=3e-2), "mismatch (projection)"

    # --- case 2: identity shortcut (Cin == Cout) -----------------------------
    x2_nhwc = jnp.transpose(
        jax.random.normal(ks[16], (N, Cout, H, W), jnp.float32), (0, 2, 3, 1))
    params2 = _make_params(ks[17:29], K, Cout, Cout, with_proj=False)

    packed2 = prepare_block_params(params2, width=W, padding=PAD)
    out2 = jax.block_until_ready(basic_block_forward(x2_nhwc, packed2))
    ref2 = ref_forward(x2_nhwc, params2, padding=PAD)
    assert out2.shape == (N, H, W, Cout)
    assert jnp.allclose(out2, ref2, rtol=5e-2, atol=3e-2), "mismatch (identity)"

    print("KERNEL_OK")
</pallas_src>

<mosaic_0001>
module attributes {stable_mosaic.version = 11 : i64} {
  func.func @_basic_block_kernel(%arg0: memref<16x32xf32, #tpu.memory_space<vmem>>, %arg1: memref<3x40x128xbf16, #tpu.memory_space<vmem>>, %arg2: memref<1x128xf32, #tpu.memory_space<vmem>>, %arg3: memref<3x80x64xbf16, #tpu.memory_space<vmem>>, %arg4: memref<1x64xf32, #tpu.memory_space<vmem>>, %arg5: memref<8x128xf32, #tpu.memory_space<vmem>>, %arg6: memref<20x40xf32, #tpu.memory_space<vmem>>, %arg7: memref<20x80xf32, #tpu.memory_space<vmem>>) attributes {dimension_semantics = [], scalar_prefetch = 0 : i64, scratch_operands = 2 : i64, tpu.core_type = #tpu.core_type<tc>} {
    %cst = arith.constant 0.000000e+00 : f32
    %0 = vector.broadcast %cst : f32 to vector<20x40xf32>
    %c0 = arith.constant 0 : index
    %c0_0 = arith.constant 0 : index
    %1 = vector.load %arg6[%c0, %c0_0] : memref<20x40xf32, #tpu.memory_space<vmem>>, vector<20x40xf32>
    tpu.vector_store %arg6[%c0, %c0_0], %0 {strides = array<i32>} : memref<20x40xf32, #tpu.memory_space<vmem>>, vector<20x40xf32>,
    %cst_1 = arith.constant 0.000000e+00 : f32
    %2 = vector.broadcast %cst_1 : f32 to vector<20x80xf32>
    %c0_2 = arith.constant 0 : index
    %c0_3 = arith.constant 0 : index
    %3 = vector.load %arg7[%c0_2, %c0_3] : memref<20x80xf32, #tpu.memory_space<vmem>>, vector<20x80xf32>
    tpu.vector_store %arg7[%c0_2, %c0_3], %2 {strides = array<i32>} : memref<20x80xf32, #tpu.memory_space<vmem>>, vector<20x80xf32>,
    %c0_4 = arith.constant 0 : index
    %c0_5 = arith.constant 0 : index
    %4 = vector.load %arg0[%c0_4, %c0_5] : memref<16x32xf32, #tpu.memory_space<vmem>>, vector<8x32xf32>
    %c1 = arith.constant 1 : index
    %c4 = arith.constant 4 : index
    %5 = vector.load %arg6[%c1, %c4] : memref<20x40xf32, #tpu.memory_space<vmem>>, vector<8x32xf32>
    tpu.vector_store %arg6[%c1, %c4], %4 {strides = array<i32>} : memref<20x40xf32, #tpu.memory_space<vmem>>, vector<8x32xf32>,
    %cst_6 = arith.constant 0.000000e+00 : f32
    %6 = vector.broadcast %cst_6 : f32 to vector<8x128xf32>
    %c0_7 = arith.constant 0 : index
    %c0_8 = arith.constant 0 : index
    %7 = vector.load %arg6[%c0_7, %c0_8] : memref<20x40xf32, #tpu.memory_space<vmem>>, vector<8x40xf32>
    %8 = arith.truncf %7 : vector<8x40xf32> to vector<8x40xbf16>
    %c0_9 = arith.constant 0 : index
    %c0_10 = arith.constant 0 : index
    %c0_11 = arith.constant 0 : index
    %9 = vector.load %arg1[%c0_9, %c0_10, %c0_11] : memref<3x40x128xbf16, #tpu.memory_space<vmem>>, vector<1x40x128xbf16>
    %10 = vector.shape_cast %9 : vector<1x40x128xbf16> to vector<40x128xbf16>
    %cst_12 = arith.constant dense<0.000000e+00> : vector<8x128xf32>
    %11 = tpu.matmul %8, %10, %cst_12 {dimension_numbers = #tpu.dot_dimension_numbers<[1], [0], [0], [1], [0, 0, 1, 1], [], []>} : vector<8x40xbf16>, vector<40x128xbf16>, vector<8x128xf32> -> vector<8x128xf32>
    %12 = arith.addf %6, %11 : vector<8x128xf32>
    %c1_13 = arith.constant 1 : index
    %c0_14 = arith.constant 0 : index
    %13 = vector.load %arg6[%c1_13, %c0_14] : memref<20x40xf32, #tpu.memory_space<vmem>>, vector<8x40xf32>
    %14 = arith.truncf %13 : vector<8x40xf32> to vector<8x40xbf16>
    %c1_15 = arith.constant 1 : index
    %c0_16 = arith.constant 0 : index
    %c0_17 = arith.constant 0 : index
    %15 = vector.load %arg1[%c1_15, %c0_16, %c0_17] : memref<3x40x128xbf16, #tpu.memory_space<vmem>>, vector<1x40x128xbf16>
    %16 = vector.shape_cast %15 : vector<1x40x128xbf16> to vector<40x128xbf16>
    %cst_18 = arith.constant dense<0.000000e+00> : vector<8x128xf32>
    %17 = tpu.matmul %14, %16, %cst_18 {dimension_numbers = #tpu.dot_dimension_numbers<[1], [0], [0], [1], [0, 0, 1, 1], [], []>} : vector<8x40xbf16>, vector<40x128xbf16>, vector<8x128xf32> -> vector<8x128xf32>
    %18 = arith.addf %12, %17 : vector<8x128xf32>
    %c2 = arith.constant 2 : index
    %c0_19 = arith.constant 0 : index
    %19 = vector.load %arg6[%c2, %c0_19] : memref<20x40xf32, #tpu.memory_space<vmem>>, vector<8x40xf32>
    %20 = arith.truncf %19 : vector<8x40xf32> to vector<8x40xbf16>
    %c2_20 = arith.constant 2 : index
    %c0_21 = arith.constant 0 : index
    %c0_22 = arith.constant 0 : index
    %21 = vector.load %arg1[%c2_20, %c0_21, %c0_22] : memref<3x40x128xbf16, #tpu.memory_space<vmem>>, vector<1x40x128xbf16>
    %22 = vector.shape_cast %21 : vector<1x40x128xbf16> to vector<40x128xbf16>
    %cst_23 = arith.constant dense<0.000000e+00> : vector<8x128xf32>
    %23 = tpu.matmul %20, %22, %cst_23 {dimension_numbers = #tpu.dot_dimension_numbers<[1], [0], [0], [1], [0, 0, 1, 1], [], []>} : vector<8x40xbf16>, vector<40x128xbf16>, vector<8x128xf32> -> vector<8x128xf32>
    %24 = arith.addf %18, %23 : vector<8x128xf32>
    %c0_24 = arith.constant 0 : index
    %c0_25 = arith.constant 0 : index
    %25 = vector.load %arg2[%c0_24, %c0_25] : memref<1x128xf32, #tpu.memory_space<vmem>>, vector<1x128xf32>
    %26 = vector.broadcast %25 : vector<1x128xf32> to vector<8x128xf32>
    %27 = arith.addf %24, %26 : vector<8x128xf32>
    %28 = vector.extract_strided_slice %27 {offsets = [0, 0], sizes = [8, 64], strides = [1, 1]} : vector<8x128xf32> to vector<8x64xf32>
    %cst_26 = arith.constant 0.000000e+00 : f32
    %29 = vector.broadcast %cst_26 : f32 to vector<8x64xf32>
    %30 = arith.maximumf %28, %29 : vector<8x64xf32>
    %31 = vector.extract_strided_slice %27 {offsets = [0, 64], sizes = [8, 64], strides = [1, 1]} : vector<8x128xf32> to vector<8x64xf32>
    %c1_27 = arith.constant 1 : index
    %c8 = arith.constant 8 : index
    %32 = vector.load %arg7[%c1_27, %c8] : memref<20x80xf32, #tpu.memory_space<vmem>>, vector<8x64xf32>
    tpu.vector_store %arg7[%c1_27, %c8], %30 {strides = array<i32>} : memref<20x80xf32, #tpu.memory_space<vmem>>, vector<8x64xf32>,
    %cst_28 = arith.constant 0.000000e+00 : f32
    %33 = vector.broadcast %cst_28 : f32 to vector<8x64xf32>
    %c0_29 = arith.constant 0 : index
    %c0_30 = arith.constant 0 : index
    %34 = vector.load %arg7[%c0_29, %c0_30] : memref<20x80xf32, #tpu.memory_space<vmem>>, vector<8x80xf32>
    %35 = arith.truncf %34 : vector<8x80xf32> to vector<8x80xbf16>
    %c0_31 = arith.constant 0 : index
    %c0_32 = arith.constant 0 : index
    %c0_33 = arith.constant 0 : index
    %36 = vector.load %arg3[%c0_31, %c0_32, %c0_33] : memref<3x80x64xbf16, #tpu.memory_space<vmem>>, vector<1x80x64xbf16>
    %37 = vector.shape_cast %36 : vector<1x80x64xbf16> to vector<80x64xbf16>
    %cst_34 = arith.constant dense<0.000000e+00> : vector<8x64xf32>
    %38 = tpu.matmul %35, %37, %cst_34 {dimension_numbers = #tpu.dot_dimension_numbers<[1], [0], [0], [1], [0, 0, 1, 1], [], []>} : vector<8x80xbf16>, vector<80x64xbf16>, vector<8x64xf32> -> vector<8x64xf32>
    %39 = arith.addf %33, %38 : vector<8x64xf32>
    %c1_35 = arith.constant 1 : index
    %c0_36 = arith.constant 0 : index
    %40 = vector.load %arg7[%c1_35, %c0_36] : memref<20x80xf32, #tpu.memory_space<vmem>>, vector<8x80xf32>
    %41 = arith.truncf %40 : vector<8x80xf32> to vector<8x80xbf16>
    %c1_37 = arith.constant 1 : index
    %c0_38 = arith.constant 0 : index
    %c0_39 = arith.constant 0 : index
    %42 = vector.load %arg3[%c1_37, %c0_38, %c0_39] : memref<3x80x64xbf16, #tpu.memory_space<vmem>>, vector<1x80x64xbf16>
    %43 = vector.shape_cast %42 : vector<1x80x64xbf16> to vector<80x64xbf16>
    %cst_40 = arith.constant dense<0.000000e+00> : vector<8x64xf32>
    %44 = tpu.matmul %41, %43, %cst_40 {dimension_numbers = #tpu.dot_dimension_numbers<[1], [0], [0], [1], [0, 0, 1, 1], [], []>} : vector<8x80xbf16>, vector<80x64xbf16>, vector<8x64xf32> -> vector<8x64xf32>
    %45 = arith.addf %39, %44 : vector<8x64xf32>
    %c2_41 = arith.constant 2 : index
    %c0_42 = arith.constant 0 : index
    %46 = vector.load %arg7[%c2_41, %c0_42] : memref<20x80xf32, #tpu.memory_space<vmem>>, vector<8x80xf32>
    %47 = arith.truncf %46 : vector<8x80xf32> to vector<8x80xbf16>
    %c2_43 = arith.constant 2 : index
    %c0_44 = arith.constant 0 : index
    %c0_45 = arith.constant 0 : index
    %48 = vector.load %arg3[%c2_43, %c0_44, %c0_45] : memref<3x80x64xbf16, #tpu.memory_space<vmem>>, vector<1x80x64xbf16>
    %49 = vector.shape_cast %48 : vector<1x80x64xbf16> to vector<80x64xbf16>
    %cst_46 = arith.constant dense<0.000000e+00> : vector<8x64xf32>
    %50 = tpu.matmul %47, %49, %cst_46 {dimension_numbers = #tpu.dot_dimension_numbers<[1], [0], [0], [1], [0, 0, 1, 1], [], []>} : vector<8x80xbf16>, vector<80x64xbf16>, vector<8x64xf32> -> vector<8x64xf32>
    %51 = arith.addf %45, %50 : vector<8x64xf32>
    %c0_47 = arith.constant 0 : index
    %c0_48 = arith.constant 0 : index
    %52 = vector.load %arg4[%c0_47, %c0_48] : memref<1x64xf32, #tpu.memory_space<vmem>>, vector<1x64xf32>
    %53 = vector.broadcast %52 : vector<1x64xf32> to vector<8x64xf32>
    %54 = arith.addf %51, %53 : vector<8x64xf32>
    %55 = arith.addf %54, %31 : vector<8x64xf32>
    %cst_49 = arith.constant 0.000000e+00 : f32
    %56 = vector.broadcast %cst_49 : f32 to vector<8x64xf32>
    %57 = arith.maximumf %55, %56 : vector<8x64xf32>
    %c8_50 = arith.constant 8 : index
    %c0_51 = arith.constant 0 : index
    %58 = vector.load %arg0[%c8_50, %c0_51] : memref<16x32xf32, #tpu.memory_space<vmem>>, vector<8x32xf32>
    %c11 = arith.constant 11 : index
    %c4_52 = arith.constant 4 : index
    %59 = vector.load %arg6[%c11, %c4_52] : memref<20x40xf32, #tpu.memory_space<vmem>>, vector<8x32xf32>
    tpu.vector_store %arg6[%c11, %c4_52], %58 {strides = array<i32>} : memref<20x40xf32, #tpu.memory_space<vmem>>, vector<8x32xf32>,
    %cst_53 = arith.constant 0.000000e+00 : f32
    %60 = vector.broadcast %cst_53 : f32 to vector<8x128xf32>
    %c10 = arith.constant 10 : index
    %c0_54 = arith.constant 0 : index
    %61 = vector.load %arg6[%c10, %c0_54] : memref<20x40xf32, #tpu.memory_space<vmem>>, vector<8x40xf32>
    %62 = arith.truncf %61 : vector<8x40xf32> to vector<8x40xbf16>
    %c0_55 = arith.constant 0 : index
    %c0_56 = arith.constant 0 : index
    %c0_57 = arith.constant 0 : index
    %63 = vector.load %arg1[%c0_55, %c0_56, %c0_57] : memref<3x40x128xbf16, #tpu.memory_space<vmem>>, vector<1x40x128xbf16>
    %64 = vector.shape_cast %63 : vector<1x40x128xbf16> to vector<40x128xbf16>
    %cst_58 = arith.constant dense<0.000000e+00> : vector<8x128xf32>
    %65 = tpu.matmul %62, %64, %cst_58 {dimension_numbers = #tpu.dot_dimension_numbers<[1], [0], [0], [1], [0, 0, 1, 1], [], []>} : vector<8x40xbf16>, vector<40x128xbf16>, vector<8x128xf32> -> vector<8x128xf32>
    %66 = arith.addf %60, %65 : vector<8x128xf32>
    %c11_59 = arith.constant 11 : index
    %c0_60 = arith.constant 0 : index
    %67 = vector.load %arg6[%c11_59, %c0_60] : memref<20x40xf32, #tpu.memory_space<vmem>>, vector<8x40xf32>
    %68 = arith.truncf %67 : vector<8x40xf32> to vector<8x40xbf16>
    %c1_61 = arith.constant 1 : index
    %c0_62 = arith.constant 0 : index
    %c0_63 = arith.constant 0 : index
    %69 = vector.load %arg1[%c1_61, %c0_62, %c0_63] : memref<3x40x128xbf16, #tpu.memory_space<vmem>>, vector<1x40x128xbf16>
    %70 = vector.shape_cast %69 : vector<1x40x128xbf16> to vector<40x128xbf16>
    %cst_64 = arith.constant dense<0.000000e+00> : vector<8x128xf32>
    %71 = tpu.matmul %68, %70, %cst_64 {dimension_numbers = #tpu.dot_dimension_numbers<[1], [0], [0], [1], [0, 0, 1, 1], [], []>} : vector<8x40xbf16>, vector<40x128xbf16>, vector<8x128xf32> -> vector<8x128xf32>
    %72 = arith.addf %66, %71 : vector<8x128xf32>
    %c12 = arith.constant 12 : index
    %c0_65 = arith.constant 0 : index
    %73 = vector.load %arg6[%c12, %c0_65] : memref<20x40xf32, #tpu.memory_space<vmem>>, vector<8x40xf32>
    %74 = arith.truncf %73 : vector<8x40xf32> to vector<8x40xbf16>
    %c2_66 = arith.constant 2 : index
    %c0_67 = arith.constant 0 : index
    %c0_68 = arith.constant 0 : index
    %75 = vector.load %arg1[%c2_66, %c0_67, %c0_68] : memref<3x40x128xbf16, #tpu.memory_space<vmem>>, vector<1x40x128xbf16>
    %76 = vector.shape_cast %75 : vector<1x40x128xbf16> to vector<40x128xbf16>
    %cst_69 = arith.constant dense<0.000000e+00> : vector<8x128xf32>
    %77 = tpu.matmul %74, %76, %cst_69 {dimension_numbers = #tpu.dot_dimension_numbers<[1], [0], [0], [1], [0, 0, 1, 1], [], []>} : vector<8x40xbf16>, vector<40x128xbf16>, vector<8x128xf32> -> vector<8x128xf32>
    %78 = arith.addf %72, %77 : vector<8x128xf32>
    %c0_70 = arith.constant 0 : index
    %c0_71 = arith.constant 0 : index
    %79 = vector.load %arg2[%c0_70, %c0_71] : memref<1x128xf32, #tpu.memory_space<vmem>>, vector<1x128xf32>
    %80 = vector.broadcast %79 : vector<1x128xf32> to vector<8x128xf32>
    %81 = arith.addf %78, %80 : vector<8x128xf32>
    %82 = vector.extract_strided_slice %81 {offsets = [0, 0], sizes = [8, 64], strides = [1, 1]} : vector<8x128xf32> to vector<8x64xf32>
    %cst_72 = arith.constant 0.000000e+00 : f32
    %83 = vector.broadcast %cst_72 : f32 to vector<8x64xf32>
    %84 = arith.maximumf %82, %83 : vector<8x64xf32>
    %85 = vector.extract_strided_slice %81 {offsets = [0, 64], sizes = [8, 64], strides = [1, 1]} : vector<8x128xf32> to vector<8x64xf32>
    %c11_73 = arith.constant 11 : index
    %c8_74 = arith.constant 8 : index
    %86 = vector.load %arg7[%c11_73, %c8_74] : memref<20x80xf32, #tpu.memory_space<vmem>>, vector<8x64xf32>
    tpu.vector_store %arg7[%c11_73, %c8_74], %84 {strides = array<i32>} : memref<20x80xf32, #tpu.memory_space<vmem>>, vector<8x64xf32>,
    %cst_75 = arith.constant 0.000000e+00 : f32
    %87 = vector.broadcast %cst_75 : f32 to vector<8x64xf32>
    %c10_76 = arith.constant 10 : index
    %c0_77 = arith.constant 0 : index
    %88 = vector.load %arg7[%c10_76, %c0_77] : memref<20x80xf32, #tpu.memory_space<vmem>>, vector<8x80xf32>
    %89 = arith.truncf %88 : vector<8x80xf32> to vector<8x80xbf16>
    %c0_78 = arith.constant 0 : index
    %c0_79 = arith.constant 0 : index
    %c0_80 = arith.constant 0 : index
    %90 = vector.load %arg3[%c0_78, %c0_79, %c0_80] : memref<3x80x64xbf16, #tpu.memory_space<vmem>>, vector<1x80x64xbf16>
    %91 = vector.shape_cast %90 : vector<1x80x64xbf16> to vector<80x64xbf16>
    %cst_81 = arith.constant dense<0.000000e+00> : vector<8x64xf32>
    %92 = tpu.matmul %89, %91, %cst_81 {dimension_numbers = #tpu.dot_dimension_numbers<[1], [0], [0], [1], [0, 0, 1, 1], [], []>} : vector<8x80xbf16>, vector<80x64xbf16>, vector<8x64xf32> -> vector<8x64xf32>
    %93 = arith.addf %87, %92 : vector<8x64xf32>
    %c11_82 = arith.constant 11 : index
    %c0_83 = arith.constant 0 : index
    %94 = vector.load %arg7[%c11_82, %c0_83] : memref<20x80xf32, #tpu.memory_space<vmem>>, vector<8x80xf32>
    %95 = arith.truncf %94 : vector<8x80xf32> to vector<8x80xbf16>
    %c1_84 = arith.constant 1 : index
    %c0_85 = arith.constant 0 : index
    %c0_86 = arith.constant 0 : index
    %96 = vector.load %arg3[%c1_84, %c0_85, %c0_86] : memref<3x80x64xbf16, #tpu.memory_space<vmem>>, vector<1x80x64xbf16>
    %97 = vector.shape_cast %96 : vector<1x80x64xbf16> to vector<80x64xbf16>
    %cst_87 = arith.constant dense<0.000000e+00> : vector<8x64xf32>
    %98 = tpu.matmul %95, %97, %cst_87 {dimension_numbers = #tpu.dot_dimension_numbers<[1], [0], [0], [1], [0, 0, 1, 1], [], []>} : vector<8x80xbf16>, vector<80x64xbf16>, vector<8x64xf32> -> vector<8x64xf32>
    %99 = arith.addf %93, %98 : vector<8x64xf32>
    %c12_88 = arith.constant 12 : index
    %c0_89 = arith.constant 0 : index
    %100 = vector.load %arg7[%c12_88, %c0_89] : memref<20x80xf32, #tpu.memory_space<vmem>>, vector<8x80xf32>
    %101 = arith.truncf %100 : vector<8x80xf32> to vector<8x80xbf16>
    %c2_90 = arith.constant 2 : index
    %c0_91 = arith.constant 0 : index
    %c0_92 = arith.constant 0 : index
    %102 = vector.load %arg3[%c2_90, %c0_91, %c0_92] : memref<3x80x64xbf16, #tpu.memory_space<vmem>>, vector<1x80x64xbf16>
    %103 = vector.shape_cast %102 : vector<1x80x64xbf16> to vector<80x64xbf16>
    %cst_93 = arith.constant dense<0.000000e+00> : vector<8x64xf32>
    %104 = tpu.matmul %101, %103, %cst_93 {dimension_numbers = #tpu.dot_dimension_numbers<[1], [0], [0], [1], [0, 0, 1, 1], [], []>} : vector<8x80xbf16>, vector<80x64xbf16>, vector<8x64xf32> -> vector<8x64xf32>
    %105 = arith.addf %99, %104 : vector<8x64xf32>
    %c0_94 = arith.constant 0 : index
    %c0_95 = arith.constant 0 : index
    %106 = vector.load %arg4[%c0_94, %c0_95] : memref<1x64xf32, #tpu.memory_space<vmem>>, vector<1x64xf32>
    %107 = vector.broadcast %106 : vector<1x64xf32> to vector<8x64xf32>
    %108 = arith.addf %105, %107 : vector<8x64xf32>
    %109 = arith.addf %108, %85 : vector<8x64xf32>
    %cst_96 = arith.constant 0.000000e+00 : f32
    %110 = vector.broadcast %cst_96 : f32 to vector<8x64xf32>
    %111 = arith.maximumf %109, %110 : vector<8x64xf32>
    %112 = tpu.concatenate %57, %111 in 1 : vector<8x64xf32>, vector<8x64xf32> -> vector<8x128xf32>
    %c0_97 = arith.constant 0 : index
    %c0_98 = arith.constant 0 : index
    %113 = vector.load %arg5[%c0_97, %c0_98] : memref<8x128xf32, #tpu.memory_space<vmem>>, vector<8x128xf32>
    tpu.vector_store %arg5[%c0_97, %c0_98], %112 {strides = array<i32>} : memref<8x128xf32, #tpu.memory_space<vmem>>, vector<8x128xf32>,
    return
  }
}

</mosaic_0001>

<bundles_post_ra>
// kernel: tpu_custom_call.1
= control target key start
LH: loop header
LB: loop body
LE: loop exit
PB: predicated region body
PF: predicated region fallthrough
CT: control target
= control target key end

     0   :  { %vm72_vm0 = vcmask 1043456   ;;  %s1454_s20 = smov 4   ;;  %v1455_v1 = vmov 0.0   ;;  %vm22_vm1 = vcmask 326656   ;;  %vm1456_vm2 = vmmov 0   ;;  %s1771_s0 = inlined_call_operand.vmem [shape: f32[16,32], index: 0, kind: input, shape index: {}]   ;;  %s1772_s1 = inlined_call_operand.vmem [shape: bf16[3,40,128], index: 1, kind: input, shape index: {}]   ;;  %s1773_s2 = inlined_call_operand.vmem [shape: f32[1,128], index: 2, kind: input, shape index: {}]   ;;  %s1774_s3 = inlined_call_operand.vmem [shape: bf16[3,80,64], index: 3, kind: input, shape index: {}]   ;;  %s1775_s4 = inlined_call_operand.vmem [shape: f32[1,64], index: 4, kind: input, shape index: {}]   ;;  %s1776_s5 = inlined_call_operand.hbm [shape: f32[8,128], index: 5, kind: output, shape index: {}]  }
   0x1   :  { %v32_v0 = vld [vmem:[%s1771_s0] sm:$0xff]  ;;  %1234 = vmatprep.subr.bf16.mxu0 %v1455_v1  ;;  %23 = vst.msk [vmem:[#allocation2] sm:$0xff] %vm22_vm1, %v1455_v1  ;;  %24 = vst.msk [vmem:[#allocation2 + $0x8] sm:$0xff] %vm22_vm1, %v1455_v1  ;;  %1264 = vmatprep.subr.bf16.mxu1 %v1455_v1  ;;  %v1386_v5 = vld [vmem:[%s1772_s1 + $0x14] sm:$0xff]  }
   0x2   :  { %34 = vrot.lane.b32.xlu0 %v32_v0, %s1454_s20  ;;  %v1384_v2 = vld [vmem:[%s1772_s1 + $0x24] ss:$0 sps:$4 sm:$0xff]   ;;  %1240 = vmatprep.mubr.msk.bf16.mxu0 %vm1456_vm2, %v1455_v1  ;;  %v1385_v4 = vld [vmem:[%s1772_s1 + $0x1c] sm:$0xff]  }
   0x3   :  { %v74_v3 = vsel %vm72_vm0, %v1384_v2, 0  ;;  %1274 = vmatprep.mubr.msk.bf16.mxu1 %vm1456_vm2, %v1455_v1 }
   0x4   :  { %1235 = vmatpush3.bf16.msra.mxu0 %v74_v3 }
   0x5   :  { %1236 = vmatprep.subr.bf16.mxu0 %v1455_v1 }
   0x8   :  { %1237 = vmatpush3.bf16.msra.mxu0 %v1385_v4 }
   0x9   :  { %1238 = vmatprep.subr.bf16.mxu0 %v1455_v1 }
   0xc   :  { %1239 = vmatpush3.bf16.msra.mxu0 %v1386_v5 }
   0xd   :  { %1244 = vmatprep.subr.bf16.mxu0 %v1455_v1 }
   0xe   :  { %10 = vsyncpa [#allocation5], 0  ;;  %vm37_vm3 = vcmask 293920   ;;  %v1387_v7 = vld [vmem:[%s1772_s1 + $0x10] ss:$0 sps:$4 sm:$0xff]   ;;  %v1388_v11 = vld [vmem:[%s1772_s1 + $0x8] sm:$0xff]  }
   0xf   :  { %v135_v10 = vsel %vm72_vm0, %v1387_v7, 0  ;;  %v1389_v12 = vld [vmem:[%s1772_s1] sm:$0xff]   ;;  %v1390_v13 = vld [vmem:[%s1772_s1 + $0x38] ss:$0 sps:$4 sm:$0xff]   ;;  %v1391_v17 = vld [vmem:[%s1772_s1 + $0x30] sm:$0xff]   ;;  %vm27_vm4 = vcmask 654336  }
  0x10   :  { %v204_v16 = vsel %vm72_vm0, %v1390_v13, 0  ;;  %v1392_v18 = vld [vmem:[%s1772_s1 + $0x28] sm:$0xff]   ;;  %v1394_v23 = vld [vmem:[%s1774_s3 + $0x20] sm:$0xff]   ;;  %28 = vst.msk [vmem:[#allocation3] sm:$0xff] %vm27_vm4, %v1455_v1  ;;  %29 = vst.msk [vmem:[#allocation3 + $0x8] sm:$0xff] %vm27_vm4, %v1455_v1  ;;  %vm25_vm5 = vcmask 322560  }
  0x11   :  { %v534_v21 = vld [vmem:[%s1771_s0 + $0x8] sm:$0xff]  ;;  %v1395_v24 = vld [vmem:[%s1774_s3 + $0x40] sm:$0xff]   ;;  %v1396_v25 = vld [vmem:[%s1774_s3 + $0x18] sm:$0xff]   ;;  %26 = vst.msk [vmem:[#allocation2 + $0x10] sm:$0xf] %vm25_vm5, %v1455_v1  ;;  %vm260_vm6 = vcmask 588864  }
  0x12   :  { %v1393_v22 = vld [vmem:[%s1774_s3 + $0x48] sm:$0xff]   ;;  %536 = vrot.lane.b32.xlu1 %v534_v21, %s1454_s20  ;;  %v1397_v26 = vld [vmem:[%s1774_s3 + $0x38] sm:$0xff]   ;;  %v1398_v27 = vld [vmem:[%s1774_s3 + $0x10] sm:$0xff]   ;;  %vm30_vm7 = vcmask 650240   ;;  %s1458_s7 = smov 64   ;;  %s1459_s17 = smov [#allocation4]  }
  0x13   :  { %1265 = vmatpush3.bf16.msra.mxu1 %v1393_v22  ;;  %v1399_v36 = vld [vmem:[%s1774_s3 + $0x30] sm:$0xff]   ;;  %v1400_v37 = vld [vmem:[%s1774_s3 + $0x8] sm:$0xff]   ;;  %v1402_v39 = vld [vmem:[%s1774_s3] sm:$0xff]   ;;  %31 = vst.msk [vmem:[#allocation3 + $0x10] sm:$0xf] %vm30_vm7, %v1455_v1  ;;  %s1042_s18 = sshll.u32 %s1459_s17, 4  ;;  %s1043_s18 = int_to_ptr.vmem [resolvable:$true] %s1042_s18 }
  0x14   :  { %1266 = vmatprep.subr.bf16.mxu1 %v1455_v1  ;;  %v1401_v38 = vld [vmem:[%s1774_s3 + $0x28] sm:$0xff]   ;;  %v1602_v42 = vld [vmem:[%s1773_s2] ss:$0 sm:$0xff]  ;;  %s1457_s2 = smov 8   ;;  %v1404_v51 = vld [vmem:[%s1772_s1 + $0x24] ss:$0 sps:$4 sm:$0xff]   ;;  %p1437_p1 = scmp.lt.s32.totalorder %s1043_s18, %s1043_s18 }
  0x15   :  { %v1403_v54 = vld [vmem:[%s1774_s3 + $0x70] sm:$0xff]   ;;  %v573_v57 = vsel %vm72_vm0, %v1404_v51, 0  ;;  %v1405_v58 = vld [vmem:[%s1774_s3 + $0x68] sm:$0xff]   ;;  %v1406_v59 = vld [vmem:[%s1772_s1 + $0x1c] sm:$0xff]   ;;  %vm1033_vm8 = vcmask 523264  }
  0x16   :  { %v1407_v60 = vld [vmem:[%s1774_s3 + $0x60] sm:$0xff]   ;;  %v1408_v61 = vld [vmem:[%s1772_s1 + $0x14] sm:$0xff]   ;;  %v1415_v13 = vld [vmem:[%s1772_s1 + $0x8] sm:$0xff]  }
  0x17   :  { %1267 = vmatpush3.bf16.msra.mxu1 %v1395_v24  ;;  %v1410_v63 = vld [vmem:[%s1772_s1 + $0x38] ss:$0 sps:$4 sm:$0xff]   ;;  %v1411_v4 = vld [vmem:[%s1774_s3 + $0x50] sm:$0xff]  }
  0x18   :  { %1268 = vmatprep.subr.bf16.mxu1 %v1455_v1  ;;  %v1409_v2 = vld [vmem:[%s1774_s3 + $0x58] sm:$0xff]   ;;  %v702_v3 = vsel %vm72_vm0, %v1410_v63, 0  ;;  %v1412_v5 = vld [vmem:[%s1772_s1 + $0x30] sm:$0xff]  }
  0x1b   :  { %1269 = vmatpush3.bf16.msra.mxu1 %v1397_v26 }
  0x1c   :  { %1270 = vmatprep.subr.bf16.mxu1 %v1455_v1 }
  0x1f   :  { %1271 = vmatpush3.bf16.msra.mxu1 %v1399_v36 }
  0x20   :  { %1272 = vmatprep.subr.bf16.mxu1 %v1455_v1 }
  0x23   :  { %1273 = vmatpush3.bf16.msra.mxu1 %v1401_v38 }
  0x24   :  { %1292 = vmatprep.subr.bf16.mxu1 %v1455_v1 }
  0x74   :  { %v35_v6 = vpop.permute.xlu0 %34 }
  0x75   :  { %38 = vst.msk [vmem:[#allocation2 + $0x1] sm:$0xff] %vm37_vm3, %v35_v6  ;;  %v1413_v6 = vld [vmem:[%s1772_s1 + $0x10] ss:$0 sps:$4 sm:$0xff]  }
  0x7c   :  { %v46_v8 = vld [vmem:[#allocation2 + $0x1] sm:$0xff] }
  0x7d   :  { %v47_v9 = vpack.c.bf16 %v46_v8, %v46_v8  ;;  %v39_v14 = vld [vmem:[#allocation2] sm:$0xff]  ;;  %v1414_v8 = vld [vmem:[%s1772_s1 + $0x28] sm:$0xff]  }
  0x7e   :  { %v40_v15 = vpack.c.bf16 %v39_v14, %v39_v14  ;;  %v177_v19 = vld [vmem:[#allocation2 + $0x2] sm:$0xff] }
  0x7f   :  { %1241 = vmatmul.mubr.msk.bf16.vlgmr.msra.gmra.mxu0 %vm22_vm1, %v47_v9  ;;  %v178_v20 = vpack.c.bf16 %v177_v19, %v177_v19  ;;  %v1416_v14 = vld [vmem:[%s1772_s1] sm:$0xff]  }
  0x80   :  { %1245 = vmatpush3.bf16.msra.mxu0 %v135_v10  ;;  %1250 = vmatprep.mubr.msk.bf16.mxu0 %vm1456_vm2, %v1455_v1  ;;  %v1419_v19 = vld [vmem:[%s1774_s3 + $0x40] sm:$0xff]  }
  0x81   :  { %1246 = vmatprep.subr.bf16.mxu0 %v1455_v1 }
  0x84   :  { %1247 = vmatpush3.bf16.msra.mxu0 %v1388_v11  ;;  %v537_v48 = vpop.permute.xlu1 %536  ;;  %v634_v11 = vsel %vm72_vm0, %v1413_v6, 0 }
  0x85   :  { %1248 = vmatprep.subr.bf16.mxu0 %v1455_v1  ;;  %539 = vst.msk [vmem:[#allocation2 + $0xb] sm:$0xff] %vm37_vm3, %v537_v48 }
  0x88   :  { %1249 = vmatpush3.bf16.msra.mxu0 %v1389_v12 }
  0x89   :  { %1254 = vmatprep.subr.bf16.mxu0 %v1455_v1 }
  0x8b   :  { %1251 = vmatmul.mubr.msk.bf16.vlgmr.msra.gmra.mxu0 %vm22_vm1, %v40_v15 }
  0x8c   :  { %1255 = vmatpush3.bf16.msra.mxu0 %v204_v16  ;;  %1260 = vmatprep.mubr.msk.bf16.mxu0 %vm1456_vm2, %v1455_v1  ;;  %v547_v62 = vld [vmem:[#allocation2 + $0xb] sm:$0xff] }
  0x8d   :  { %1256 = vmatprep.subr.bf16.mxu0 %v1455_v1  ;;  %v548_v0 = vpack.c.bf16 %v547_v62, %v547_v62  ;;  %v676_v9 = vld [vmem:[#allocation2 + $0xc] sm:$0xff] }
  0x8e   :  { %v677_v12 = vpack.c.bf16 %v676_v9, %v676_v9  ;;  %v540_v15 = vld [vmem:[#allocation2 + $0xa] sm:$0xff] }
  0x8f   :  { %v541_v16 = vpack.c.bf16 %v540_v15, %v540_v15  ;;  %v1427_v62 = vld [vmem:[%s1774_s3 + $0x70] sm:$0xff]  }
  0x90   :  { %1257 = vmatpush3.bf16.msra.mxu0 %v1391_v17  ;;  %v1417_v17 = vld [vmem:[%s1774_s3 + $0x48] sm:$0xff]  }
  0x91   :  { %1258 = vmatprep.subr.bf16.mxu0 %v1455_v1 }
  0x94   :  { %1259 = vmatpush3.bf16.msra.mxu0 %v1392_v18  ;;  %v1418_v18 = vld [vmem:[%s1774_s3 + $0x20] sm:$0xff]  }
  0x95   :  { %1278 = vmatprep.subr.bf16.mxu0 %v1455_v1 }
  0x97   :  { %1261 = vmatmul.mubr.msk.bf16.vlgmr.msra.gmra.mxu0 %vm22_vm1, %v178_v20  ;;  %v1420_v20 = vld [vmem:[%s1774_s3 + $0x18] sm:$0xff]  }
  0x98   :  { %1288 = vmatprep.mubr.msk.bf16.mxu0 %vm1456_vm2, %v1455_v1  ;;  %1279 = vmatpush3.bf16.msra.mxu0 %v1394_v23 }
  0x99   :  { %1280 = vmatprep.subr.bf16.mxu0 %v1455_v1 }
  0x9c   :  { %1281 = vmatpush3.bf16.msra.mxu0 %v1396_v25 }
  0x9d   :  { %1282 = vmatprep.subr.bf16.mxu0 %v1455_v1 }
  0xa0   :  { %1283 = vmatpush3.bf16.msra.mxu0 %v1398_v27 }
  0xa1   :  { %1284 = vmatprep.subr.bf16.mxu0 %v1455_v1 }
  0xa4   :  { %1285 = vmatpush3.bf16.msra.mxu0 %v1400_v37 }
  0xa5   :  { %1286 = vmatprep.subr.bf16.mxu0 %v1455_v1 }
  0xa8   :  { %1287 = vmatpush3.bf16.msra.mxu0 %v1402_v39  ;;  %v1421_v39 = vld [vmem:[%s1774_s3 + $0x38] sm:$0xff]  }
  0xa9   :  { %1306 = vmatprep.subr.bf16.mxu0 %v1455_v1 }
 0x13f   :  { %v110_v28 = vpop.f32.mrf.mxu0 }
 0x141   :  { %v1242_v29 = vpop.f32.mrf.mxu0 }
 0x143   :  { %v113_v30 = vpop.f32.mrf.mxu0 }
 0x145   :  { %v1243_v31 = vpop.f32.mrf.mxu0 }
 0x14b   :  { %v171_v32 = vpop.f32.mrf.mxu0 }
 0x14c   :  { %v172_v40 = vadd.f32 %v171_v32, %v110_v28 }
 0x14d   :  { %v1252_v33 = vpop.f32.mrf.mxu0 }
 0x14f   :  { %v174_v34 = vpop.f32.mrf.mxu0 }
 0x151   :  { %v1253_v35 = vpop.f32.mrf.mxu0 }
 0x157   :  { %v240_v41 = vpop.f32.mrf.mxu0 }
 0x158   :  { %v246_v43 = vadd.f32 %v240_v41, %v172_v40  ;;  %v1422_v40 = vld [vmem:[%s1774_s3 + $0x10] sm:$0xff]  }
 0x159   :  { %v1262_v44 = vpop.f32.mrf.mxu0 }
 0x15a   :  { %v1607_v45 = vadd.f32 %v1602_v42, %v246_v43 }
 0x15b   :  { %v243_v46 = vpop.f32.mrf.mxu0 }
 0x15c   :  { %v255_v47 = vmax.f32 %v1607_v45, 0.0  ;;  %v1423_v46 = vld [vmem:[%s1774_s3 + $0x30] sm:$0xff]  }
 0x15d   :  { %v1263_v49 = vpop.f32.mrf.mxu0 }
 0x15e   :  { %257 = vrot.lane.b32.xlu0 %v255_v47, %s1457_s2  ;;  %v1424_v47 = vld [vmem:[%s1774_s3 + $0x8] sm:$0xff]  }
 0x1d0   :  { %v258_v50 = vpop.permute.xlu0 %257 }
 0x1d1   :  { %261 = vst.msk [vmem:[#allocation3 + $0x1] sm:$0xff] %vm260_vm6, %v258_v50  ;;  %v1425_v50 = vld [vmem:[%s1774_s3 + $0x28] sm:$0xff]  }
 0x1d8   :  { %v274_v52 = vld [vmem:[#allocation3 + $0x1] sm:$0xff] }
 0x1d9   :  { %v262_v53 = vld [vmem:[#allocation3] sm:$0xff]  ;;  %v275_v55 = vpack.c.bf16 %v274_v52, %v274_v52  ;;  %v1426_v52 = vld [vmem:[%s1774_s3] sm:$0xff]  }
 0x1da   :  { %v263_v56 = vpack.c.bf16 %v262_v53, %v262_v53  ;;  %v433_v7 = vld [vmem:[#allocation3 + $0x2] sm:$0xff] }
 0x1db   :  { %1275 = vmatmul.mubr.msk.bf16.vlgmr.msra.gmra.mxu1 %vm27_vm4, %v275_v55  ;;  %v434_v10 = vpack.c.bf16 %v433_v7, %v433_v7 }
 0x1dc   :  { %1289 = vmatmul.mubr.msk.bf16.vlgmr.msra.gmra.mxu0 %vm27_vm4, %v263_v56  ;;  %1293 = vmatpush3.bf16.msra.mxu1 %v1403_v54 }
 0x1dd   :  { %1307 = vmatpush3.bf16.msra.mxu0 %v573_v57  ;;  %1294 = vmatprep.subr.bf16.mxu1 %v1455_v1 }
 0x1de   :  { %1308 = vmatprep.subr.bf16.mxu0 %v1455_v1  ;;  %1312 = vmatprep.mubr.msk.bf16.mxu0 %vm1456_vm2, %v1455_v1 }
 0x1df   :  { %1302 = vmatprep.mubr.msk.bf16.mxu1 %vm1456_vm2, %v1455_v1 }
 0x1e0   :  { %1295 = vmatpush3.bf16.msra.mxu1 %v1405_v58 }
 0x1e1   :  { %1309 = vmatpush3.bf16.msra.mxu0 %v1406_v59  ;;  %1296 = vmatprep.subr.bf16.mxu1 %v1455_v1 }
 0x1e2   :  { %1310 = vmatprep.subr.bf16.mxu0 %v1455_v1 }
 0x1e4   :  { %1297 = vmatpush3.bf16.msra.mxu1 %v1407_v60 }
 0x1e5   :  { %1311 = vmatpush3.bf16.msra.mxu0 %v1408_v61  ;;  %1298 = vmatprep.subr.bf16.mxu1 %v1455_v1 }
 0x1e6   :  { %1326 = vmatprep.subr.bf16.mxu0 %v1455_v1 }
 0x1e8   :  { %1313 = vmatmul.mubr.msk.bf16.vlgmr.msra.gmra.mxu0 %vm22_vm1, %v548_v0  ;;  %1299 = vmatpush3.bf16.msra.mxu1 %v1409_v2  ;;  %v1429_v0 = vld [vmem:[%s1774_s3 + $0x60] sm:$0xff]   ;;  %v1430_v2 = vld [vmem:[%s1774_s3 + $0x58] sm:$0xff]  }
 0x1e9   :  { %1327 = vmatpush3.bf16.msra.mxu0 %v702_v3  ;;  %1300 = vmatprep.subr.bf16.mxu1 %v1455_v1  ;;  %v1431_v3 = vld [vmem:[%s1774_s3 + $0x50] sm:$0xff]  }
 0x1ea   :  { %1328 = vmatprep.subr.bf16.mxu0 %v1455_v1  ;;  %1332 = vmatprep.mubr.msk.bf16.mxu0 %vm1456_vm2, %v1455_v1 }
 0x1ec   :  { %1301 = vmatpush3.bf16.msra.mxu1 %v1411_v4 }
 0x1ed   :  { %1329 = vmatpush3.bf16.msra.mxu0 %v1412_v5  ;;  %1316 = vmatprep.subr.bf16.mxu1 %v1455_v1 }
 0x1ee   :  { %1330 = vmatprep.subr.bf16.mxu0 %v1455_v1 }
 0x1ef   :  { %1303 = vmatmul.mubr.msk.bf16.vlgmr.msra.gmra.mxu1 %vm27_vm4, %v434_v10 }
 0x1f0   :  { %1317 = vmatpush3.bf16.msra.mxu1 %v634_v11  ;;  %1322 = vmatprep.mubr.msk.bf16.mxu1 %vm1456_vm2, %v1455_v1 }
 0x1f1   :  { %1331 = vmatpush3.bf16.msra.mxu0 %v1414_v8  ;;  %1318 = vmatprep.subr.bf16.mxu1 %v1455_v1 }
 0x1f2   :  { %1350 = vmatprep.subr.bf16.mxu0 %v1455_v1 }
 0x1f4   :  { %1333 = vmatmul.mubr.msk.bf16.vlgmr.msra.gmra.mxu0 %vm22_vm1, %v677_v12  ;;  %1319 = vmatpush3.bf16.msra.mxu1 %v1415_v13 }
 0x1f5   :  { %1360 = vmatprep.mubr.msk.bf16.mxu0 %vm1456_vm2, %v1455_v1  ;;  %1320 = vmatprep.subr.bf16.mxu1 %v1455_v1 }
 0x1f6   :  { %1351 = vmatpush3.bf16.msra.mxu0 %v1418_v18 }
 0x1f7   :  { %1352 = vmatprep.subr.bf16.mxu0 %v1455_v1 }
 0x1f8   :  { %1321 = vmatpush3.bf16.msra.mxu1 %v1416_v14 }
 0x1f9   :  { %1336 = vmatprep.subr.bf16.mxu1 %v1455_v1 }
 0x1fa   :  { %1353 = vmatpush3.bf16.msra.mxu0 %v1420_v20 }
 0x1fb   :  { %1323 = vmatmul.mubr.msk.bf16.vlgmr.msra.gmra.mxu1 %vm22_vm1, %v541_v16  ;;  %1354 = vmatprep.subr.bf16.mxu0 %v1455_v1 }
 0x1fc   :  { %1346 = vmatprep.mubr.msk.bf16.mxu1 %vm1456_vm2, %v1455_v1  ;;  %1337 = vmatpush3.bf16.msra.mxu1 %v1417_v17 }
 0x1fd   :  { %1338 = vmatprep.subr.bf16.mxu1 %v1455_v1 }
 0x1fe   :  { %1355 = vmatpush3.bf16.msra.mxu0 %v1422_v40 }
 0x1ff   :  { %1356 = vmatprep.subr.bf16.mxu0 %v1455_v1 }
 0x200   :  { %1339 = vmatpush3.bf16.msra.mxu1 %v1419_v19 }
 0x201   :  { %1340 = vmatprep.subr.bf16.mxu1 %v1455_v1 }
 0x202   :  { %1357 = vmatpush3.bf16.msra.mxu0 %v1424_v47 }
 0x203   :  { %1358 = vmatprep.subr.bf16.mxu0 %v1455_v1 }
 0x204   :  { %1341 = vmatpush3.bf16.msra.mxu1 %v1421_v39 }
 0x205   :  { %1342 = vmatprep.subr.bf16.mxu1 %v1455_v1 }
 0x206   :  { %1359 = vmatpush3.bf16.msra.mxu0 %v1426_v52 }
 0x208   :  { %1343 = vmatpush3.bf16.msra.mxu1 %v1423_v46 }
 0x209   :  { %1344 = vmatprep.subr.bf16.mxu1 %v1455_v1 }
 0x20c   :  { %1345 = vmatpush3.bf16.msra.mxu1 %v1425_v50 }
 0x20d   :  { %1364 = vmatprep.subr.bf16.mxu1 %v1455_v1 }
 0x29b   :  { %v354_v21 = vpop.f32.mrf.mxu1 }
 0x29c   :  { %v427_v22 = vpop.f32.mrf.mxu0 }
 0x29d   :  { %v428_v23 = vadd.f32 %v427_v22, %v354_v21  ;;  %v1276_v24 = vpop.f32.mrf.mxu1 }
 0x29e   :  { %v1290_v25 = vpop.f32.mrf.mxu0 }
 0x29f   :  { %v357_v26 = vpop.f32.mrf.mxu1 }
 0x2a0   :  { %v430_v27 = vpop.f32.mrf.mxu0 }
 0x2a1   :  { %v1277_v28 = vpop.f32.mrf.mxu1 }
 0x2a2   :  { %v1291_v29 = vpop.f32.mrf.mxu0 }
 0x2a8   :  { %v609_v30 = vpop.f32.mrf.mxu0 }
 0x2aa   :  { %v1314_v31 = vpop.f32.mrf.mxu0 }
 0x2ac   :  { %v612_v32 = vpop.f32.mrf.mxu0 }
 0x2ae   :  { %v1315_v33 = vpop.f32.mrf.mxu0 }
 0x2af   :  { %v513_v34 = vpop.f32.mrf.mxu1 }
 0x2b0   :  { %v1707_v35 = vadd.f32 %v513_v34, %v428_v23 }
 0x2b1   :  { %v1304_v36 = vpop.f32.mrf.mxu1 }
 0x2b3   :  { %v516_v37 = vpop.f32.mrf.mxu1 }
 0x2b4   :  { %v738_v38 = vpop.f32.mrf.mxu0 }
 0x2b5   :  { %v1305_v41 = vpop.f32.mrf.mxu1 }
 0x2b6   :  { %v1334_v43 = vpop.f32.mrf.mxu0 }
 0x2b8   :  { %v741_v44 = vpop.f32.mrf.mxu0 }
 0x2ba   :  { %v1335_v48 = vpop.f32.mrf.mxu0 }
 0x2bb   :  { %v670_v49 = vpop.f32.mrf.mxu1 }
 0x2bc   :  { %v671_v51 = vadd.f32 %v670_v49, %v609_v30 }
 0x2bd   :  { %v1324_v53 = vpop.f32.mrf.mxu1 }
 0x2be   :  { %v744_v54 = vadd.f32 %v738_v38, %v671_v51 }
 0x2bf   :  { %v673_v55 = vpop.f32.mrf.mxu1 }
 0x2c0   :  { %v752_v56 = vadd.f32 %v1602_v42, %v744_v54 }
 0x2c1   :  { %v1325_v57 = vpop.f32.mrf.mxu1 }
 0x2c2   :  { %1024 = vrot.lane.b32.xlu0 %v752_v56, %s1458_s7  ;;  %v753_v58 = vmax.f32 %v752_v56, 0.0 }
 0x2c4   :  { %755 = vrot.lane.b32.xlu1 %v753_v58, %s1457_s2 }
 0x2c8   :  { %529 = vrot.lane.b32.xlu1 %v1607_v45, %s1458_s7  ;;  %v1428_v45 = vld [vmem:[%s1774_s3 + $0x68] sm:$0xff]  }
 0x334   :  { %v1025_v19 = vpop.permute.xlu0 %1024 }
 0x336   :  { %v756_v59 = vpop.permute.xlu1 %755 }
 0x337   :  { %758 = vst.msk [vmem:[#allocation3 + $0xb] sm:$0xff] %vm260_vm6, %v756_v59 }
 0x33a   :  { %v530_v24 = vpop.permute.xlu1 %529 }
 0x33e   :  { %v771_v60 = vld [vmem:[#allocation3 + $0xb] sm:$0xff] }
 0x33f   :  { %v759_v61 = vld [vmem:[#allocation3 + $0xa] sm:$0xff]  ;;  %v772_v42 = vpack.c.bf16 %v771_v60, %v771_v60 }
 0x340   :  { %v760_v63 = vpack.c.bf16 %v759_v61, %v759_v61  ;;  %v929_v4 = vld [vmem:[#allocation3 + $0xc] sm:$0xff] }
 0x341   :  { %1347 = vmatmul.mubr.msk.bf16.vlgmr.msra.gmra.mxu1 %vm27_vm4, %v772_v42  ;;  %v930_v5 = vpack.c.bf16 %v929_v4, %v929_v4 }
 0x342   :  { %1361 = vmatmul.mubr.msk.bf16.vlgmr.msra.gmra.mxu0 %vm27_vm4, %v760_v63  ;;  %1365 = vmatpush3.bf16.msra.mxu1 %v1427_v62 }
 0x343   :  { %1374 = vmatprep.mubr.msk.bf16.mxu1 %vm1456_vm2, %v1455_v1  ;;  %1366 = vmatprep.subr.bf16.mxu1 %v1455_v1 }
 0x346   :  { %1367 = vmatpush3.bf16.msra.mxu1 %v1428_v45 }
 0x347   :  { %1368 = vmatprep.subr.bf16.mxu1 %v1455_v1 }
 0x34a   :  { %1369 = vmatpush3.bf16.msra.mxu1 %v1429_v0 }
 0x34b   :  { %1370 = vmatprep.subr.bf16.mxu1 %v1455_v1 }
 0x34e   :  { %1371 = vmatpush3.bf16.msra.mxu1 %v1430_v2 }
 0x34f   :  { %1372 = vmatprep.subr.bf16.mxu1 %v1455_v1  ;;  %v1111_v1 = vld [vmem:[%s1775_s4] ss:$0 sm:$0xff]  ;;  %s1432_s4 = scalar_lea.vmem %s1043_s18, 128 }
 0x350   :  { %v527_v25 = vadd.f32 %v1111_v1, %v1707_v35  ;;  %p1433_p0 = scmp.ne.s32.totalorder %s1043_s18, %s1432_s4  ;;  %p1438_p2 = scmp.lt.s32.totalorder %s1432_s4, %s1432_s4 }
 0x352   :  { %1373 = vmatpush3.bf16.msra.mxu1 %v1431_v3  ;;  %v532_v26 = vadd.f32 %v530_v24, %v527_v25  ;;  %p1439_p3 = por %p1438_p2, %p1437_p1 }
 0x354   :  { %v533_v27 = vmax.f32 %v532_v26, 0.0  ;;  %p1440_p4 = pnand %p1439_p3, %p1433_p0 }
 0x355   :  { %1375 = vmatmul.mubr.msk.bf16.vlgmr.msra.gmra.mxu1 %vm27_vm4, %v930_v5 }
 0x401   :  { %v850_v6 = vpop.f32.mrf.mxu1 }
 0x402   :  { %v923_v7 = vpop.f32.mrf.mxu0 }
 0x403   :  { %v1348_v8 = vpop.f32.mrf.mxu1  ;;  %v924_v14 = vadd.f32 %v923_v7, %v850_v6 }
 0x404   :  { %v1362_v9 = vpop.f32.mrf.mxu0 }
 0x405   :  { %v853_v10 = vpop.f32.mrf.mxu1 }
 0x406   :  { %v926_v11 = vpop.f32.mrf.mxu0 }
 0x407   :  { %v1349_v12 = vpop.f32.mrf.mxu1 }
 0x408   :  { %v1363_v13 = vpop.f32.mrf.mxu0 }
 0x415   :  { %v1008_v15 = vpop.f32.mrf.mxu1 }
 0x416   :  { %v1014_v16 = vadd.f32 %v1008_v15, %v924_v14 }
 0x417   :  { %v1376_v17 = vpop.f32.mrf.mxu1 }
 0x418   :  { %v1022_v18 = vadd.f32 %v1111_v1, %v1014_v16 }
 0x419   :  { %v1011_v20 = vpop.f32.mrf.mxu1 }
 0x41a   :  { %v1027_v21 = vadd.f32 %v1025_v19, %v1022_v18 }
 0x41b   :  { %v1377_v22 = vpop.f32.mrf.mxu1 }
 0x41c   :  { %v1028_v23 = vmax.f32 %v1027_v21, 0.0 }
 0x41e   :  { %1030 = vrot.lane.b32.xlu0 %v1028_v23, %s1458_s7 }
 0x490   :  { %v1031_v28 = vpop.permute.xlu0 %1030 }
 0x491   :  { %v1034_v29 = vsel %vm1033_vm8, %v533_v27, %v1031_v28 }
 0x492   :  { %1035 = vst [vmem:[#allocation4] sm:$0xff] %v1034_v29 }
 0x493   :  { %1443 = shalt.err (!%p1440_p4)
}
 0x494   :  { %1045 = dma.vmem_to_hbm [thread:$0]  %s1043_s18, 128, %s1776_s5, [#allocation5]  }
 0x495   :  { %1452 = dma.done.wait [#allocation5], 128  }
 0x496   :  { %1453 = vsyncadd [#allocation5], 4294967168 }
 0x497   :  { %1049 = vsyncpa [#allocation5], 1 }

</bundles_post_ra>
